<compile_context>
chip_gen: v7x
topology: tpu7x:2x2x1
jax: 0.10.0
libtpu: 0.0.40
codegen_flags: <defaults>
</compile_context>

<pallas_src>
import jax
import jax.numpy as jnp
from jax.experimental import pallas as pl
from jax.experimental.pallas import tpu as pltpu


def isr_kernel(x_ref, z_ref):
    # x_ref: (B, 8, T) tile in VMEM; z_ref: (8, T) tile in VMEM.
    x = x_ref[...].astype(jnp.float32)
    # w = x / (1 - x); division moved to the EUP slot (exact reciprocal).
    w = x * pl.reciprocal(1.0 - x, approx=False)
    # Single-pass reduction over the batch axis (pure VPU vreg adds).
    s = jnp.sum(w, axis=0)
    # Fused finalize: y = 1 + s,  z = s / y.
    z = s * pl.reciprocal(1.0 + s, approx=False)
    z_ref[...] = z.astype(z_ref.dtype)


def _round_up(a, b):
    return ((a + b - 1) // b) * b


def _choose_tile(batch, n_flat, itemsize):
    """Pick lane-tile width T (multiple of 128) so one (B, 8, T) input block
    stays around ~2 MiB (double-buffered -> ~4 MiB), well under the scoped
    VMEM limit on every generation (v5e 16 MiB, v6e 32 MiB, v7x 32 MiB)."""
    target_bytes = 2 * 1024 * 1024
    t = target_bytes // (batch * 8 * max(itemsize, 4))  # account for f32 upcast
    t = max(128, (t // 128) * 128)
    # No point tiling wider than the (padded) data itself.
    t = min(t, _round_up(max(n_flat // 8, 1), 128))
    return t


def isr(x):
    """x: (B, C, H, W) float array.  Returns z: (C, H, W) (reduce over dim 0)."""
    B, C, H, W = x.shape
    N = C * H * W
    itemsize = jnp.dtype(x.dtype).itemsize

    T = _choose_tile(B, N, itemsize)
    # Pad the flattened per-batch plane so it reshapes to (8, L) with L % T == 0.
    Npad = _round_up(N, 8 * T)
    L = Npad // 8
    grid = L // T

    xf = x.reshape(B, N)
    if Npad != N:
        # Padding with zeros is safe: w = 0/(1-0) = 0, contributes nothing.
        xf = jnp.pad(xf, ((0, 0), (0, Npad - N)))
    x3 = xf.reshape(B, 8, L)

    flops = 3 * B * Npad + 2 * Npad
    bytes_accessed = (B * Npad + Npad) * itemsize
    transcendentals = B * Npad + Npad  # reciprocals

    out = pl.pallas_call(
        isr_kernel,
        out_shape=jax.ShapeDtypeStruct((8, L), x.dtype),
        grid=(grid,),
        in_specs=[pl.BlockSpec((B, 8, T), lambda i: (0, 0, i))],
        out_specs=pl.BlockSpec((8, T), lambda i: (0, i)),
        compiler_params=pltpu.CompilerParams(
            dimension_semantics=("parallel",),  # tiles independent -> megacore
        ),
        cost_estimate=pl.CostEstimate(
            flops=flops,
            transcendentals=transcendentals,
            bytes_accessed=bytes_accessed,
        ),
    )(x3)

    z = out.reshape(Npad)[:N].reshape(C, H, W)
    return z


def isr_ref(x):
    # Pure-JAX reference mirroring the PyTorch forward exactly (two-pass form).
    w = x / (1.0 - x)
    y = 1.0 + jnp.sum(w, axis=0)
    z = jnp.sum(w / y, axis=0)
    return z


if __name__ == "__main__":
    key = jax.random.PRNGKey(0)
    # Keep values away from 1.0 so (1 - x) stays well-conditioned.
    x = jax.random.uniform(
        key, (2, 4, 16, 16), dtype=jnp.float32, minval=0.05, maxval=0.5
    )

    z = jax.block_until_ready(isr(x))
    z_ref = jax.block_until_ready(isr_ref(x))

    assert z.shape == (4, 16, 16), z.shape
    assert jnp.allclose(z, z_ref, atol=1e-5, rtol=1e-5), "mismatch vs reference"

    print("KERNEL_OK")
</pallas_src>

<mosaic_0001>
module attributes {stable_mosaic.version = 11 : i64} {
  func.func @isr_kernel(%arg0: i32, %arg1: memref<2x8x128xf32, #tpu.memory_space<vmem>>, %arg2: memref<8x128xf32, #tpu.memory_space<vmem>>) attributes {dimension_semantics = [#tpu.dimension_semantics<parallel>], iteration_bounds = array<i64: 1>, scalar_prefetch = 0 : i64, scratch_operands = 0 : i64, tpu.core_type = #tpu.core_type<tc>, window_params = [{transform_indices = @transform_0, window_bounds = array<i64: 2, 8, 128>}, {transform_indices = @transform_1, window_bounds = array<i64: 8, 128>}]} {
    %c0 = arith.constant 0 : index
    %c0_0 = arith.constant 0 : index
    %c0_1 = arith.constant 0 : index
    %0 = vector.load %arg1[%c0, %c0_0, %c0_1] : memref<2x8x128xf32, #tpu.memory_space<vmem>>, vector<2x8x128xf32>
    %cst = arith.constant 1.000000e+00 : f32
    %1 = vector.broadcast %cst : f32 to vector<2x8x128xf32>
    %2 = arith.subf %1, %0 : vector<2x8x128xf32>
    %3 = tpu.reciprocal %2 : vector<2x8x128xf32> -> vector<2x8x128xf32>
    %4 = arith.mulf %0, %3 : vector<2x8x128xf32>
    %cst_2 = arith.constant dense<0.000000e+00> : vector<8x128xf32>
    %5 = vector.multi_reduction <add>, %4, %cst_2 [0] : vector<2x8x128xf32> to vector<8x128xf32>
    %cst_3 = arith.constant 1.000000e+00 : f32
    %6 = vector.broadcast %cst_3 : f32 to vector<8x128xf32>
    %7 = arith.addf %6, %5 : vector<8x128xf32>
    %8 = tpu.reciprocal %7 : vector<8x128xf32> -> vector<8x128xf32>
    %9 = arith.mulf %5, %8 : vector<8x128xf32>
    %c0_4 = arith.constant 0 : index
    %c0_5 = arith.constant 0 : index
    %10 = vector.load %arg2[%c0_4, %c0_5] : memref<8x128xf32, #tpu.memory_space<vmem>>, vector<8x128xf32>
    tpu.vector_store %arg2[%c0_4, %c0_5], %9 {strides = array<i32>} : memref<8x128xf32, #tpu.memory_space<vmem>>, vector<8x128xf32>,
    return
  }
  func.func @transform_0(%arg0: i32) -> (i32, i32, i32) {
    %c0_i32 = arith.constant 0 : i32
    %c0_i32_0 = arith.constant 0 : i32
    %c0_i32_1 = arith.constant 0 : i32
    return %c0_i32, %c0_i32_0, %arg0 : i32, i32, i32
  }
  func.func @transform_1(%arg0: i32) -> (i32, i32) {
    %c0_i32 = arith.constant 0 : i32
    %c0_i32_0 = arith.constant 0 : i32
    return %c0_i32, %arg0 : i32, i32
  }
}

</mosaic_0001>

<bundles_post_ra>
// kernel: tpu_custom_call.1
= control target key start
LH: loop header
LB: loop body
LE: loop exit
PB: predicated region body
PF: predicated region fallthrough
CT: control target
= control target key end

     0   :  { %6 = vsyncpa [#allocation3], 0  ;;  %s147_s0 = inlined_call_operand.hbm [shape: f32[2,8,128], index: 0, kind: input, shape index: {}]   ;;  %s148_s1 = inlined_call_operand.hbm [shape: f32[8,128], index: 1, kind: output, shape index: {}]  }
   0x1   :  { %7 = vsyncpa [#allocation4], 0  ;;  %s109_s6 = smov [#allocation2]   ;;  %s61_s10 = scalar_lea.hbm %s147_s0, 256 }
   0x2   :  { %s13_s7 = sshll.u32 %s109_s6, 4  ;;  %p62_p0 = scmp.ne.s32.totalorder %s147_s0, %s61_s10  ;;  %s14_s7 = int_to_ptr.vmem [resolvable:$true] %s13_s7 }
   0x3   :  { %p65_p1 = scmp.lt.u32.totalorder %s61_s10, %s147_s0 }
   0x5   :  { %p67_p2 = pnand %p65_p1, %p62_p0 }
   0x7   :  { %70 = shalt.err (!%p67_p2)
}
   0x8   :  { %s71_s15 = scalar_lea.vmem %s14_s7, 256  ;;  %p76_p4 = scmp.lt.s32.totalorder %s14_s7, %s14_s7 }
   0x9   :  { %p72_p3 = scmp.ne.s32.totalorder %s14_s7, %s71_s15  ;;  %p77_p5 = scmp.lt.s32.totalorder %s71_s15, %s71_s15 }
   0xb   :  { %p78_p6 = por %p77_p5, %p76_p4 }
   0xd   :  { %p79_p7 = pnand %p78_p6, %p72_p3 }
   0xf   :  { %82 = shalt.err (!%p79_p7)
}
  0x10   :  { %s110_s16 = smov 128   ;;  %s111_s17 = smov 8  }
  0x11   :  { %19 = dma.hbm_to_vmem [thread:$0]  %s147_s0, 256, %s14_s7, [#allocation3], %s110_s16, %s110_s16, %s111_s17  }
  0x12   :  { %105 = dma.done.wait [#allocation3], 256  }
  0x13   :  { %106 = vsyncadd [#allocation3], 4294967040  ;;  %v23_v0 = vld [vmem:[#allocation2] sm:$0xff]  ;;  %v24_v1 = vld [vmem:[#allocation2 + $0x8] sm:$0xff]  ;;  %s112_s20 = smov [#allocation5]  }
  0x14   :  { %v25_v2 = vsub.f32 1.0, %v23_v0  ;;  %v26_v3 = vsub.f32 1.0, %v24_v1  ;;  %s42_s21 = sshll.u32 %s112_s20, 4  ;;  %s43_s21 = int_to_ptr.vmem [resolvable:$true] %s42_s21 }
  0x15   :  { %s83_s0 = scalar_lea.vmem %s43_s21, 128  ;;  %p88_p9 = scmp.lt.s32.totalorder %s43_s21, %s43_s21 }
  0x16   :  { %55 = vrcp.f32 %v25_v2  ;;  %p84_p8 = scmp.ne.s32.totalorder %s43_s21, %s83_s0  ;;  %p89_p10 = scmp.lt.s32.totalorder %s83_s0, %s83_s0 }
  0x17   :  { %57 = vrcp.f32 %v26_v3 }
  0x18   :  { %p90_p11 = por %p89_p10, %p88_p9 }
  0x1a   :  { %p91_p12 = pnand %p90_p11, %p84_p8 }
  0x20   :  { %v56_v4 = vpop.eup %55 }
  0x21   :  { %v58_v5 = vpop.eup %57  ;;  %v29_v6 = vmul.f32 %v56_v4, %v23_v0 }
  0x22   :  { %v30_v7 = vmul.f32 %v58_v5, %v24_v1 }
  0x24   :  { %v31_v8 = vadd.f32 %v30_v7, %v29_v6 }
  0x26   :  { %v32_v9 = vadd.f32 1.0, %v31_v8 }
  0x28   :  { %59 = vrcp.f32 %v32_v9 }
  0x32   :  { %v60_v10 = vpop.eup %59 }
  0x33   :  { %v34_v11 = vmul.f32 %v60_v10, %v31_v8 }
  0x35   :  { %35 = vst [vmem:[#allocation5] sm:$0xff] %v34_v11 }
  0x36   :  { %94 = shalt.err (!%p91_p12)
}
  0x37   :  { %s95_s24 = scalar_lea.hbm %s148_s1, 128 }
  0x38   :  { %p96_p13 = scmp.ne.s32.totalorder %s148_s1, %s95_s24  ;;  %p99_p0 = scmp.lt.u32.totalorder %s95_s24, %s148_s1 }
  0x3a   :  { %p101_p1 = pnand %p99_p0, %p96_p13 }
  0x3c   :  { %104 = shalt.err (!%p101_p1)
}
  0x3d   :  { %45 = dma.vmem_to_hbm [thread:$0]  %s43_s21, 128, %s148_s1, [#allocation4]  }
  0x3e   :  { %107 = dma.done.wait [#allocation4], 128  }
  0x3f   :  { %108 = vsyncadd [#allocation4], 4294967168 }
  0x40   :  { %49 = vsyncpa [#allocation3], 1 }
  0x41   :  { %50 = vsyncpa [#allocation4], 1 }

</bundles_post_ra>
